<compile_context>
chip_gen: v5e
topology: v5e:2x2
jax: 0.10.0
libtpu: 0.0.40
codegen_flags: <defaults>
</compile_context>

<pallas_src>
import jax
import jax.numpy as jnp
from jax.experimental import pallas as pl
from jax.experimental.pallas import tpu as pltpu


def _semseg_kernel(x_ref, scale_ref, shift_ref, w_emb_ref, b_emb_ref,
                   w_rem_ref, b_rem_ref, emb_ref, remap_ref):
    # x_ref:     (C_in, tp)  pixel tile, channels on sublanes / pixels on lanes
    # scale_ref: (C_in, 1)   folded BN scale = gamma / sqrt(var + eps)      (f32)
    # shift_ref: (C_in, 1)   folded BN shift = beta - mean * scale          (f32)
    # w_emb_ref: (D, C_in)   1x1 conv weight
    # b_emb_ref: (D, 1)      1x1 conv bias                                  (f32)
    # w_rem_ref: (K, C_in)   G @ conv_w   with G = bigraph @ unify_prototype
    # b_rem_ref: (K, 1)      G @ conv_b                                     (f32)
    # emb_ref:   (D, tp)     output block (lane-dense)
    # remap_ref: (K, tp)     output block (lane-dense)
    x = x_ref[...].astype(jnp.float32)
    # BatchNorm (eval, folded) + ReLU; scale/shift broadcast along lanes (f32 math).
    h = jnp.maximum(x * scale_ref[...] + shift_ref[...], 0.0)
    h_mm = h.astype(w_emb_ref.dtype)          # no-op for f32 weights; bf16 if mxu_bf16
    # Two MXU passes writing straight into the output refs (f32 accumulate).
    emb = jnp.dot(w_emb_ref[...], h_mm, preferred_element_type=jnp.float32)
    emb_ref[...] = (emb + b_emb_ref[...]).astype(emb_ref.dtype)
    rem = jnp.dot(w_rem_ref[...], h_mm, preferred_element_type=jnp.float32)
    remap_ref[...] = (rem + b_rem_ref[...]).astype(remap_ref.dtype)


def _pick_pixel_tile(P, B, tp_target):
    """Balanced 128-aligned pixel tile; never exceeds P (full-dim block escape)."""
    n_tiles = max(1, pl.cdiv(P, tp_target))
    if B == 1 and n_tiles == 1 and P >= 256:
        n_tiles = 2                      # give both v7x TensorCores work for B == 1
    tp = pl.cdiv(pl.cdiv(P, n_tiles), 128) * 128
    return min(tp, P)


def semseg_forward_pallas(feat_nchw, bn_params, conv_w, conv_b,
                          unify_prototype, bigraph, *, eps=1e-5,
                          tp_target=8192, out_dtype=jnp.bfloat16,
                          mxu_bf16=False):
    """Fused BN -> ReLU -> 1x1conv -> prototype -> bipartite-remap pipeline.

    feat_nchw:        (B, C_in, H, W) float32 or bfloat16
    bn_params:        dict with gamma/beta/mean/var, each (C_in,)
    conv_w:           (D, C_in)   (PyTorch Conv2d 1x1 weight squeezed)
    conv_b:           (D,)
    unify_prototype:  (N_unify, D)
    bigraph:          (K, N_unify)  bipartite_graphs[dataset_id] (0/1 row selector)
    Returns {'logits': (B,K,H,W), 'emb': (B,D,H,W)} in `out_dtype`.
    """
    B, C_in, H, W = feat_nchw.shape
    D = conv_w.shape[0]
    K = bigraph.shape[0]
    P = H * W

    tp = _pick_pixel_tile(P, B, tp_target)
    n_p = pl.cdiv(P, tp)                 # ragged last block handled by Pallas masking

    # Free reshape (contiguous collapse) -- no pad, no extra HBM round trip.
    x = feat_nchw.reshape(B, C_in, P)

    # Fold BatchNorm (eval) into a per-channel affine.
    gamma = bn_params["gamma"].astype(jnp.float32)
    beta = bn_params["beta"].astype(jnp.float32)
    mean = bn_params["mean"].astype(jnp.float32)
    var = bn_params["var"].astype(jnp.float32)
    scale = gamma * jax.lax.rsqrt(var + eps)
    shift = beta - mean * scale
    scale_col = scale.reshape(C_in, 1)
    shift_col = shift.reshape(C_in, 1)

    # Fold constant matmuls:  remap = graph @ proto @ (W h + b) = (G W) h + (G b).
    hi = jax.lax.Precision.HIGHEST
    G = jnp.dot(bigraph.astype(jnp.float32), unify_prototype.astype(jnp.float32),
                precision=hi)                                        # (K, D)
    w_emb = conv_w.astype(jnp.float32)                               # (D, C_in)
    w_rem = jnp.dot(G, w_emb, precision=hi)                          # (K, C_in)
    b_emb = conv_b.astype(jnp.float32).reshape(D, 1)
    b_rem = jnp.dot(G, conv_b.astype(jnp.float32), precision=hi).reshape(K, 1)
    if mxu_bf16:                       # v7x: keep matmul off the critical path
        w_emb = w_emb.astype(jnp.bfloat16)
        w_rem = w_rem.astype(jnp.bfloat16)

    in_bytes = B * P * C_in * feat_nchw.dtype.itemsize
    out_bytes = B * P * (D + K) * jnp.dtype(out_dtype).itemsize
    cost = pl.CostEstimate(flops=2 * (D + K) * C_in * B * P + 4 * C_in * B * P,
                           bytes_accessed=in_bytes + out_bytes,
                           transcendentals=0)

    const2 = lambda b, p: (0, 0)

    emb_flat, remap_flat = pl.pallas_call(
        _semseg_kernel,
        out_shape=(
            jax.ShapeDtypeStruct((B, D, P), out_dtype),
            jax.ShapeDtypeStruct((B, K, P), out_dtype),
        ),
        grid_spec=pl.GridSpec(
            grid=(B, n_p),
            in_specs=[
                pl.BlockSpec((None, C_in, tp), lambda b, p: (b, 0, p)),
                pl.BlockSpec((C_in, 1), const2),
                pl.BlockSpec((C_in, 1), const2),
                pl.BlockSpec((D, C_in), const2),
                pl.BlockSpec((D, 1), const2),
                pl.BlockSpec((K, C_in), const2),
                pl.BlockSpec((K, 1), const2),
            ],
            out_specs=(
                pl.BlockSpec((None, D, tp), lambda b, p: (b, 0, p)),
                pl.BlockSpec((None, K, tp), lambda b, p: (b, 0, p)),
            ),
        ),
        compiler_params=pltpu.CompilerParams(
            dimension_semantics=("parallel", "parallel"),
            vmem_limit_bytes=32 * 1024 * 1024),
        cost_estimate=cost,
    )(x, scale_col, shift_col, w_emb, b_emb, w_rem, b_rem)

    emb = emb_flat.reshape(B, D, H, W)
    remap = remap_flat.reshape(B, K, H, W)
    return {"logits": remap, "emb": emb}


def _reference_jax(feat, bn, conv_w, conv_b, proto, graph, eps=1e-5):
    x = (feat - bn["mean"][None, :, None, None]) / jnp.sqrt(
        bn["var"][None, :, None, None] + eps)
    x = x * bn["gamma"][None, :, None, None] + bn["beta"][None, :, None, None]
    x = jnp.maximum(x, 0.0)
    emb = jnp.einsum("bchw,dc->bdhw", x, conv_w) + conv_b[None, :, None, None]
    logits = jnp.einsum("bchw,nc->bnhw", emb, proto)
    remap = jnp.einsum("bchw,nc->bnhw", logits, graph)
    return remap, emb


if __name__ == "__main__":
    key = jax.random.PRNGKey(0)
    ks = jax.random.split(key, 8)

    # Small, module-consistent shapes.
    B, C_in, H, W = 2, 32, 16, 16          # input_shape channels = 32
    D = 64                                  # OUTPUT_FEAT_DIM
    datasets_cats = [8, 12]                 # DATASETS_CATS
    total_cats = sum(datasets_cats)
    N_unify = total_cats                    # NUM_UNIFY_CLASS == total_cats
    dataset_id = 0
    K = datasets_cats[dataset_id]

    feat = jax.random.normal(ks[0], (B, C_in, H, W), jnp.float32)

    # _BNReluConv parameters (deterministic init).
    bn = {
        "gamma": 1.0 + 0.1 * jax.random.normal(ks[1], (C_in,), jnp.float32),
        "beta": 0.1 * jax.random.normal(ks[2], (C_in,), jnp.float32),
        "mean": 0.05 * jax.random.normal(ks[3], (C_in,), jnp.float32),
        "var": jnp.abs(1.0 + 0.1 * jax.random.normal(ks[4], (C_in,), jnp.float32)),
    }
    conv_w = 0.05 * jax.random.normal(ks[5], (D, C_in), jnp.float32)  # 1x1 conv
    conv_b = 0.01 * jax.random.normal(ks[6], (D,), jnp.float32)

    # unify_prototype ~ trunc_normal(std=0.02) (plain normal is close enough).
    unify_prototype = 0.02 * jax.random.normal(ks[7], (N_unify, D), jnp.float32)

    # bipartite graph for dataset_id: identity block (num_unify_class == total_cats).
    cur = sum(datasets_cats[:dataset_id])
    bigraph = jnp.zeros((K, N_unify), jnp.float32)
    bigraph = bigraph.at[jnp.arange(K), cur + jnp.arange(K)].set(1.0)

    ref_remap, ref_emb = _reference_jax(feat, bn, conv_w, conv_b,
                                        unify_prototype, bigraph)

    # f32-output path: tight check against the reference.
    out32 = semseg_forward_pallas(feat, bn, conv_w, conv_b, unify_prototype,
                                  bigraph, out_dtype=jnp.float32)
    jax.block_until_ready(out32)
    assert jnp.allclose(out32["emb"], ref_emb, atol=2e-4, rtol=2e-4)
    assert jnp.allclose(out32["logits"], ref_remap, atol=2e-4, rtol=2e-4)

    # Default (bf16-output, bandwidth-optimized) path: loose check.
    out = semseg_forward_pallas(feat, bn, conv_w, conv_b, unify_prototype, bigraph)
    jax.block_until_ready(out)
    assert out["emb"].dtype == jnp.bfloat16 and out["logits"].dtype == jnp.bfloat16
    assert jnp.allclose(out["emb"].astype(jnp.float32), ref_emb, atol=2e-2, rtol=2e-2)
    assert jnp.allclose(out["logits"].astype(jnp.float32), ref_remap,
                        atol=2e-2, rtol=2e-2)

    # TODO(synk): training branch (boolean per-dataset remap over a dataset_ids
    # tensor), with_datasets_aux prototypes, and get_encode_lb_vec (CLIP text
    # encoding) are host/config logic, not kernel work.
    print("KERNEL_OK")
</pallas_src>

<mosaic_0001>
module attributes {stable_mosaic.version = 11 : i64} {
  func.func @_semseg_kernel(%arg0: i32, %arg1: i32, %arg2: memref<1x32x256xf32, #tpu.memory_space<vmem>>, %arg3: memref<32x1xf32, #tpu.memory_space<vmem>>, %arg4: memref<32x1xf32, #tpu.memory_space<vmem>>, %arg5: memref<64x32xf32, #tpu.memory_space<vmem>>, %arg6: memref<64x1xf32, #tpu.memory_space<vmem>>, %arg7: memref<8x32xf32, #tpu.memory_space<vmem>>, %arg8: memref<8x1xf32, #tpu.memory_space<vmem>>, %arg9: memref<1x64x256xf32, #tpu.memory_space<vmem>>, %arg10: memref<1x8x256xf32, #tpu.memory_space<vmem>>) attributes {dimension_semantics = [#tpu.dimension_semantics<parallel>, #tpu.dimension_semantics<parallel>], iteration_bounds = array<i64: 2, 1>, scalar_prefetch = 0 : i64, scratch_operands = 0 : i64, tpu.core_type = #tpu.core_type<tc>, window_params = [{transform_indices = @transform_0, window_bounds = array<i64: 1, 32, 256>}, {pipeline_mode = #tpu.pipeline_mode<synchronous>, transform_indices = @transform_1, window_bounds = array<i64: 32, 1>}, {pipeline_mode = #tpu.pipeline_mode<synchronous>, transform_indices = @transform_2, window_bounds = array<i64: 32, 1>}, {pipeline_mode = #tpu.pipeline_mode<synchronous>, transform_indices = @transform_3, window_bounds = array<i64: 64, 32>}, {pipeline_mode = #tpu.pipeline_mode<synchronous>, transform_indices = @transform_4, window_bounds = array<i64: 64, 1>}, {pipeline_mode = #tpu.pipeline_mode<synchronous>, transform_indices = @transform_5, window_bounds = array<i64: 8, 32>}, {pipeline_mode = #tpu.pipeline_mode<synchronous>, transform_indices = @transform_6, window_bounds = array<i64: 8, 1>}, {transform_indices = @transform_7, window_bounds = array<i64: 1, 64, 256>}, {transform_indices = @transform_8, window_bounds = array<i64: 1, 8, 256>}]} {
    %c0 = arith.constant 0 : index
    %c0_0 = arith.constant 0 : index
    %c0_1 = arith.constant 0 : index
    %0 = vector.load %arg2[%c0, %c0_0, %c0_1] : memref<1x32x256xf32, #tpu.memory_space<vmem>>, vector<1x32x256xf32>
    %1 = vector.shape_cast %0 : vector<1x32x256xf32> to vector<32x256xf32>
    %c0_2 = arith.constant 0 : index
    %c0_3 = arith.constant 0 : index
    %2 = vector.load %arg3[%c0_2, %c0_3] : memref<32x1xf32, #tpu.memory_space<vmem>>, vector<32x1xf32>
    %3 = vector.broadcast %2 : vector<32x1xf32> to vector<32x256xf32>
    %4 = arith.mulf %1, %3 : vector<32x256xf32>
    %c0_4 = arith.constant 0 : index
    %c0_5 = arith.constant 0 : index
    %5 = vector.load %arg4[%c0_4, %c0_5] : memref<32x1xf32, #tpu.memory_space<vmem>>, vector<32x1xf32>
    %6 = vector.broadcast %5 : vector<32x1xf32> to vector<32x256xf32>
    %7 = arith.addf %4, %6 : vector<32x256xf32>
    %cst = arith.constant 0.000000e+00 : f32
    %8 = vector.broadcast %cst : f32 to vector<32x256xf32>
    %9 = arith.maximumf %7, %8 : vector<32x256xf32>
    %c0_6 = arith.constant 0 : index
    %c0_7 = arith.constant 0 : index
    %10 = vector.load %arg5[%c0_6, %c0_7] : memref<64x32xf32, #tpu.memory_space<vmem>>, vector<64x32xf32>
    %cst_8 = arith.constant dense<0.000000e+00> : vector<64x256xf32>
    %11 = tpu.matmul %10, %9, %cst_8 {dimension_numbers = #tpu.dot_dimension_numbers<[1], [0], [0], [1], [0, 0, 1, 1], [], []>} : vector<64x32xf32>, vector<32x256xf32>, vector<64x256xf32> -> vector<64x256xf32>
    %c0_9 = arith.constant 0 : index
    %c0_10 = arith.constant 0 : index
    %12 = vector.load %arg6[%c0_9, %c0_10] : memref<64x1xf32, #tpu.memory_space<vmem>>, vector<64x1xf32>
    %13 = vector.broadcast %12 : vector<64x1xf32> to vector<64x256xf32>
    %14 = arith.addf %11, %13 : vector<64x256xf32>
    %c0_11 = arith.constant 0 : index
    %c0_12 = arith.constant 0 : index
    %c0_13 = arith.constant 0 : index
    %15 = vector.load %arg9[%c0_11, %c0_12, %c0_13] : memref<1x64x256xf32, #tpu.memory_space<vmem>>, vector<1x64x256xf32>
    %16 = vector.shape_cast %15 : vector<1x64x256xf32> to vector<64x256xf32>
    %17 = vector.shape_cast %14 : vector<64x256xf32> to vector<1x64x256xf32>
    tpu.vector_store %arg9[%c0_11, %c0_12, %c0_13], %17 {strides = array<i32>} : memref<1x64x256xf32, #tpu.memory_space<vmem>>, vector<1x64x256xf32>,
    %c0_14 = arith.constant 0 : index
    %c0_15 = arith.constant 0 : index
    %18 = vector.load %arg7[%c0_14, %c0_15] : memref<8x32xf32, #tpu.memory_space<vmem>>, vector<8x32xf32>
    %cst_16 = arith.constant dense<0.000000e+00> : vector<8x256xf32>
    %19 = tpu.matmul %18, %9, %cst_16 {dimension_numbers = #tpu.dot_dimension_numbers<[1], [0], [0], [1], [0, 0, 1, 1], [], []>} : vector<8x32xf32>, vector<32x256xf32>, vector<8x256xf32> -> vector<8x256xf32>
    %c0_17 = arith.constant 0 : index
    %c0_18 = arith.constant 0 : index
    %20 = vector.load %arg8[%c0_17, %c0_18] : memref<8x1xf32, #tpu.memory_space<vmem>>, vector<8x1xf32>
    %21 = vector.broadcast %20 : vector<8x1xf32> to vector<8x256xf32>
    %22 = arith.addf %19, %21 : vector<8x256xf32>
    %c0_19 = arith.constant 0 : index
    %c0_20 = arith.constant 0 : index
    %c0_21 = arith.constant 0 : index
    %23 = vector.load %arg10[%c0_19, %c0_20, %c0_21] : memref<1x8x256xf32, #tpu.memory_space<vmem>>, vector<1x8x256xf32>
    %24 = vector.shape_cast %23 : vector<1x8x256xf32> to vector<8x256xf32>
    %25 = vector.shape_cast %22 : vector<8x256xf32> to vector<1x8x256xf32>
    tpu.vector_store %arg10[%c0_19, %c0_20, %c0_21], %25 {strides = array<i32>} : memref<1x8x256xf32, #tpu.memory_space<vmem>>, vector<1x8x256xf32>,
    return
  }
  func.func @transform_0(%arg0: i32, %arg1: i32) -> (i32, i32, i32) {
    %c0_i32 = arith.constant 0 : i32
    %c0_i32_0 = arith.constant 0 : i32
    return %arg0, %c0_i32, %arg1 : i32, i32, i32
  }
  func.func @transform_1(%arg0: i32, %arg1: i32) -> (i32, i32) {
    %c0_i32 = arith.constant 0 : i32
    %c0_i32_0 = arith.constant 0 : i32
    %c0_i32_1 = arith.constant 0 : i32
    return %c0_i32, %c0_i32_0 : i32, i32
  }
  func.func @transform_2(%arg0: i32, %arg1: i32) -> (i32, i32) {
    %c0_i32 = arith.constant 0 : i32
    %c0_i32_0 = arith.constant 0 : i32
    %c0_i32_1 = arith.constant 0 : i32
    return %c0_i32, %c0_i32_0 : i32, i32
  }
  func.func @transform_3(%arg0: i32, %arg1: i32) -> (i32, i32) {
    %c0_i32 = arith.constant 0 : i32
    %c0_i32_0 = arith.constant 0 : i32
    %c0_i32_1 = arith.constant 0 : i32
    return %c0_i32, %c0_i32_0 : i32, i32
  }
  func.func @transform_4(%arg0: i32, %arg1: i32) -> (i32, i32) {
    %c0_i32 = arith.constant 0 : i32
    %c0_i32_0 = arith.constant 0 : i32
    %c0_i32_1 = arith.constant 0 : i32
    return %c0_i32, %c0_i32_0 : i32, i32
  }
  func.func @transform_5(%arg0: i32, %arg1: i32) -> (i32, i32) {
    %c0_i32 = arith.constant 0 : i32
    %c0_i32_0 = arith.constant 0 : i32
    %c0_i32_1 = arith.constant 0 : i32
    return %c0_i32, %c0_i32_0 : i32, i32
  }
  func.func @transform_6(%arg0: i32, %arg1: i32) -> (i32, i32) {
    %c0_i32 = arith.constant 0 : i32
    %c0_i32_0 = arith.constant 0 : i32
    %c0_i32_1 = arith.constant 0 : i32
    return %c0_i32, %c0_i32_0 : i32, i32
  }
  func.func @transform_7(%arg0: i32, %arg1: i32) -> (i32, i32, i32) {
    %c0_i32 = arith.constant 0 : i32
    %c0_i32_0 = arith.constant 0 : i32
    return %arg0, %c0_i32, %arg1 : i32, i32, i32
  }
  func.func @transform_8(%arg0: i32, %arg1: i32) -> (i32, i32, i32) {
    %c0_i32 = arith.constant 0 : i32
    %c0_i32_0 = arith.constant 0 : i32
    return %arg0, %c0_i32, %arg1 : i32, i32, i32
  }
}

</mosaic_0001>

<bundles_post_ra>
// kernel: tpu_custom_call.1
= control target key start
LH: loop header
LB: loop body
LE: loop exit
PB: predicated region body
PF: predicated region fallthrough
CT: control target
= control target key end

     0   :  { %s1326_s0 = inlined_call_operand.vmem [shape: f32[2,32,256], index: 0, kind: input, shape index: {}]   ;;  %s1327_s1 = inlined_call_operand.vmem [shape: f32[32,1], index: 1, kind: input, shape index: {}]   ;;  %s1328_s2 = inlined_call_operand.vmem [shape: f32[32,1], index: 2, kind: input, shape index: {}]   ;;  %s1329_s3 = inlined_call_operand.vmem [shape: f32[64,32], index: 3, kind: input, shape index: {}]   ;;  %s1330_s4 = inlined_call_operand.vmem [shape: f32[64,1], index: 4, kind: input, shape index: {}]   ;;  %s1331_s5 = inlined_call_operand.vmem [shape: f32[8,32], index: 5, kind: input, shape index: {}]   ;;  %s1332_s6 = inlined_call_operand.vmem [shape: f32[8,1], index: 6, kind: input, shape index: {}]   ;;  %s1333_s7 = inlined_call_operand.hbm [shape: f32[2,64,256], index: 7, kind: output, shape index: {0}]   ;;  %s1334_s8 = inlined_call_operand.hbm [shape: f32[2,8,256], index: 8, kind: output, shape index: {1}]  }
   0x1   :  { %1335 = sst [smem:[#allocation8_spill]] %s1326_s0 }
   0x2   :  { %1336 = sst [smem:[#allocation9_spill]] %s1327_s1 }
   0x3   :  { %1337 = sst [smem:[#allocation10_spill]] %s1328_s2 }
   0x4   :  { %14 = vsyncpa [#allocation3], 0 }
   0x5   :  { %16 = vsyncpa [#allocation3 + $0x1], 0 }
   0x6   :  { %17 = vsyncpa [#allocation5], 0 }
   0x7   :  { %19 = vsyncpa [#allocation5 + $0x1], 0  ;;  %s1087_s27 = smov 0   ;;  %s1089_s28 = smov 0  }
   0x8   :  { %s1091_s29 = smov 0   ;;  %s1093_s30 = smov 0  }
   0x9   :  { %s1095_s9 = smov 0   ;;  %s1097_s10 = smov 0  }
   0xa LB: > { %s815_s11 = sadd.s32 4294967295, %s1037_s10   ;;  %s816_s12 = sadd.s32 4294967294, %s1037_s10   ;;  %s1037_s10 = sphi %s1097_s10, %s25_s10   ;;  %s1033_s9 = sphi %s1095_s9, %s1347_s9   ;;  %s1029_s30 = sphi %s1093_s30, %s1346_s30   ;;  %s1025_s29 = sphi %s1091_s29, %s1345_s29   ;;  %s1021_s28 = sphi %s1089_s28, %s1344_s28   ;;  %s1017_s27 = sphi %s1087_s27, %s1343_s27  }
   0xb   : > { %s37_s13 = sadd.s32 1, %s1033_s9  ;;  %s200_s14 = sadd.s32 1, %s1025_s29 }
   0xc   : > { %p39_p0 = scmp.ge.s32.totalorder %s37_s13, 2  ;;  %p210_p1 = scmp.ne.s32.totalorder %s1025_s29, %s1021_s28 }
   0xd   : > { %p211_p2 = scmp.eq.s32.totalorder %s815_s11, 1  ;;  %p216_p3 = scmp.ne.s32.totalorder %s1021_s28, %s1017_s27 }
   0xe   : > { %s1349_s13 = smov (%p39_p0, %s37_s13), 0  ;;  %p217_p5 = scmp.eq.s32.totalorder %s816_s12, 1 }
   0xf   : > { %p1127_p4 = por %p211_p2, %p210_p1  ;;  %s195_s16 = ssub.s32 %s1033_s9, %s1349_s13 }
  0x10   : > { %p819_p6 = scmp.ge.s32.totalorder %s1037_s10, 1  ;;  %p198_p7 = scmp.eq.s32.totalorder %s195_s16, 0 }
  0x11   : > { %p1134_p8 = por %p217_p5, %p216_p3  ;;  %p294_p9 = scmp.lt.s32.totalorder %s1037_s10, 3 }
  0x12   : > { %s1140_s18 = scalar_select %p198_p7, %s1025_s29, %s200_s14  }
  0x13   : > { %p295_p10 = pnand %p819_p6, %p294_p9 }
  0x14   : > { %s1340_s2 = sld [smem:[#allocation10_spill]] (!%p295_p10)  ;;  %p338_p11 = scmp.lt.s32.totalorder (!%p295_p10), %s1029_s30, 1 }
  0x15   : > { %298 = sbr.rel (%p295_p10) target bundleno = 345 (0x159), region = 48  ;;  %s1341_s1 = sld [smem:[#allocation9_spill]] (!%p295_p10) }
  0x16   : > { %s1342_s0 = sld [smem:[#allocation8_spill]] (!%p295_p10)  ;;  %s1244_s12 = sand.u32 (!%p295_p10), 1, %s1021_s28  }
  0x17   : > { %s821_s19 = sshll.u32 (!%p295_p10), %s1244_s12, 4  ;;  %s852_s20 = sshll.u32 (!%p295_p10), %s1029_s30, 4 }
  0x18   : > { %s698_s24 = scalar_lea.hbm (!%p295_p10), %s1334_s8, %s852_s20 }
  0x1a   : > { %v391_v0 = vld [vmem:[%s1340_s2 + $0x10] sm:$0xff]  ;;  %v392_v1 = vld [vmem:[%s1340_s2 + $0x18] sm:$0xff]  ;;  %v1039_v3 = vmov 0   ;;  %v437_v7 = vld [vmem:[%s1330_s4] sm:$0xff]  ;;  %s339_s14 = scalar_select %p338_p11, %s1029_s30, 1  ;;  %vm485_vm0 = vcmask 261120  }
  0x1b   : > { %v360_v2 = vld [vmem:[%s1341_s1 + $0x18] sm:$0xff]  ;;  %926 = vset.pattern.permute.xlu2 %v1039_v3  ;;  %925 = vset.pattern.permute.xlu1 %v1039_v3  ;;  %v357_v4 = vld [vmem:[%s1341_s1] sm:$0xff]  ;;  %v359_v5 = vld [vmem:[%s1341_s1 + $0x10] sm:$0xff] }
  0x1c   : > { %924 = vset.pattern.permute.xlu0 %v1039_v3  ;;  %405 = vperm.xlu2 %926, %v391_v0   ;;  %v358_v6 = vld [vmem:[%s1341_s1 + $0x8] sm:$0xff]  ;;  %v389_v9 = vld [vmem:[%s1340_s2] sm:$0xff]  ;;  %v440_v10 = vld [vmem:[%s1330_s4 + $0x18] sm:$0xff]  ;;  %s850_s16 = sshll.u32 %s339_s14, 6  ;;  %s820_s14 = sshll.u32 %s1244_s12, 7 }
  0x1d   : > { %410 = vperm.xlu1 %925, %v392_v1   ;;  %378 = vperm.xlu0 %924, %v360_v2   ;;  %v390_v8 = vld [vmem:[%s1340_s2 + $0x8] sm:$0xff]  ;;  %v439_v12 = vld [vmem:[%s1330_s4 + $0x10] sm:$0xff]  ;;  %v441_v14 = vld [vmem:[%s1330_s4 + $0x20] sm:$0xff]  ;;  %s345_s21 = scalar_lea.vmem %s1342_s0, %s850_s16  ;;  %s1247_s16 = scalar_lea.vmem [#allocation2], %s820_s14 }
  0x1e   : > { %v438_v11 = vld [vmem:[%s1330_s4 + $0x8] sm:$0xff]  ;;  %v443_v13 = vld [vmem:[%s1330_s4 + $0x30] sm:$0xff]  ;;  %v444_v16 = vld [vmem:[%s1330_s4 + $0x38] sm:$0xff]  ;;  %s336_s14 = scalar_lea.vmem [#allocation4], %s821_s19  ;;  %s702_s1 = sshll.u32 %s698_s24, 4  ;;  %s703_s1 = int_to_ptr.hbm [resolvable:$true] %s702_s1 }
  0x1f   : > { %v442_v15 = vld [vmem:[%s1330_s4 + $0x28] sm:$0xff]  ;;  %v609_v17 = vld [vmem:[%s1332_s6] sm:$0xff]  ;;  %v355_v18 = vld [vmem:[%s345_s21 + $0x30] sm:$0xff]  ;;  %s700_s0 = sshll.u32 %s336_s14, 4  ;;  %s666_s19 = scalar_lea.sflag [#allocation5], %s1244_s12  ;;  %s701_s0 = int_to_ptr.vmem [resolvable:$true] %s700_s0 }
  0x20   : > { %v356_v19 = vld [vmem:[%s345_s21 + $0x38] sm:$0xff]  ;;  %v353_v29 = vld [vmem:[%s345_s21 + $0x20] sm:$0xff]  ;;  %v354_v30 = vld [vmem:[%s345_s21 + $0x28] sm:$0xff]  ;;  %s941_s20 = sshra.s32 %s703_s1, 4  ;;  %s947_s24 = scalar_lea.hbm %s1334_s8, 32  ;;  %s942_s20 = int_to_ptr.hbm [resolvable:$true] %s941_s20 }
  0x21   : > { %v349_v37 = vld [vmem:[%s345_s21] sm:$0xff]  ;;  %v351_v38 = vld [vmem:[%s345_s21 + $0x10] sm:$0xff]  ;;  %v352_v39 = vld [vmem:[%s345_s21 + $0x18] sm:$0xff]  ;;  %p948_p1 = scmp.lt.s32.totalorder %s942_s20, %s1334_s8 }
  0x22   : > { %v350_v40 = vld [vmem:[%s345_s21 + $0x8] sm:$0xff]  ;;  %v429_v58 = vld [vmem:[%s1329_s3] sm:$0xff]  ;;  %v435_v61 = vld [vmem:[%s1329_s3 + $0x30] sm:$0xff]  ;;  %s851_s21 = sshll.u32 %s1029_s30, 7  ;;  %s680_s30 = sshll.u32 %s1247_s16, 4  ;;  %s1273_s30 = int_to_ptr.vmem [resolvable:$true] %s680_s30 }
  0x23   : > { %v434_v59 = vld [vmem:[%s1329_s3 + $0x28] sm:$0xff]  ;;  %v431_v62 = vld [vmem:[%s1329_s3 + $0x10] sm:$0xff]  ;;  %v436_v63 = vld [vmem:[%s1329_s3 + $0x38] sm:$0xff]  ;;  %s679_s11 = scalar_lea.hbm %s1333_s7, %s851_s21  ;;  %s943_s21 = scalar_lea.hbm %s942_s20, 16 }
  0x24   : > { %363 = vperm.xlu2 %926, %v357_v4   ;;  %v430_v60 = vld [vmem:[%s1329_s3 + $0x8] sm:$0xff]  ;;  %v432_v0 = vld [vmem:[%s1329_s3 + $0x18] sm:$0xff]  ;;  %v608_v1 = vld [vmem:[%s1331_s5] sm:$0xff]  ;;  %s682_s2 = sshll.u32 %s679_s11, 4  ;;  %p944_p12 = scmp.ne.s32.totalorder %s942_s20, %s943_s21  ;;  %s1275_s2 = int_to_ptr.hbm [resolvable:$true] %s682_s2 }
  0x25   : > { %373 = vperm.xlu0 %924, %v359_v5   ;;  %368 = vperm.xlu1 %925, %v358_v6   ;;  %v433_v2 = vld [vmem:[%s1329_s3 + $0x20] sm:$0xff]  ;;  %p949_p2 = scmp.lt.s32.totalorder %s947_s24, %s943_s21 }
  0x26   : > { %p945_p13 = pnand %p944_p12, %p1127_p4 }
  0x27   : > { %p950_p3 = por %p949_p2, %p948_p1 }
  0x28   : > { %p946_p0 = pneg %p945_p13 }
  0x2a   : > { %p951_p5 = pnand %p950_p3, %p946_p0 }
  0x2c   : > { %447 = vperm.xlu2 %926, %v437_v7  }
  0x2d   : > { %400 = vperm.xlu0 %924, %v390_v8   ;;  %395 = vperm.xlu1 %925, %v389_v9  }
  0x34   : > { %462 = vperm.xlu2 %926, %v440_v10  }
  0x35   : > { %452 = vperm.xlu0 %924, %v438_v11   ;;  %457 = vperm.xlu1 %925, %v439_v12  }
  0x3c   : > { %477 = vperm.xlu2 %926, %v443_v13  }
  0x3d   : > { %467 = vperm.xlu0 %924, %v441_v14   ;;  %472 = vperm.xlu1 %925, %v442_v15  }
  0x45   : > { %482 = vperm.xlu0 %924, %v444_v16   ;;  %612 = vperm.xlu1 %925, %v609_v17  }
  0x76   : > { %v406_v26 = vpop.permute.xlu2 %405 }
  0x7e   : > { %v364_v43 = vpop.permute.xlu2 %363 }
  0x7f   : > { %v381_v44 = vmul.f32 %v364_v43, %v349_v37  ;;  %v382_v47 = vmul.f32 %v364_v43, %v350_v40 }
  0x86   : > { %v448_v3 = vpop.permute.xlu2 %447 }
  0x8e   : > { %v463_v10 = vpop.permute.xlu2 %462 }
  0x8f   : > { %v411_v20 = vpop.permute.xlu1 %410  ;;  %v379_v21 = vpop.permute.xlu0 %378 }
  0x90   : > { %v387_v22 = vmul.f32 %v379_v21, %v355_v18  ;;  %v388_v23 = vmul.f32 %v379_v21, %v356_v19 }
  0x92   : > { %v419_v24 = vadd.f32 %v411_v20, %v387_v22  ;;  %v420_v25 = vadd.f32 %v411_v20, %v388_v23 }
  0x94   : > { %v427_v27 = vmax.f32 %v419_v24, 0.0  ;;  %v428_v28 = vmax.f32 %v420_v25, 0.0 }
  0x96   : > { %522 = vmatpush.msra.mxu0 %v427_v27  ;;  %853 = vmatpush.msra.mxu2 %v427_v27  ;;  %v478_v21 = vpop.permute.xlu2 %477 }
  0x97   : > { %563 = vmatpush.msra.mxu1 %v428_v28  ;;  %857 = vmatpush.msra.mxu3 %v428_v28  ;;  %v374_v31 = vpop.permute.xlu0 %373  ;;  %v369_v32 = vpop.permute.xlu1 %368 }
  0x98   : > { %v385_v33 = vmul.f32 %v374_v31, %v353_v29  ;;  %v386_v34 = vmul.f32 %v374_v31, %v354_v30  ;;  %v383_v45 = vmul.f32 %v369_v32, %v351_v38  ;;  %v384_v46 = vmul.f32 %v369_v32, %v352_v39 }
  0x9a   : > { %v417_v35 = vadd.f32 %v406_v26, %v385_v33  ;;  %v418_v36 = vadd.f32 %v406_v26, %v386_v34 }
  0x9c   : > { %v425_v41 = vmax.f32 %v417_v35, 0.0  ;;  %v426_v42 = vmax.f32 %v418_v36, 0.0 }
  0x9e   : > { %523 = vmatpush.msra.mxu0 %v425_v41  ;;  %854 = vmatpush.msra.mxu2 %v425_v41 }
  0x9f   : > { %564 = vmatpush.msra.mxu1 %v426_v42  ;;  %858 = vmatpush.msra.mxu3 %v426_v42  ;;  %v401_v48 = vpop.permute.xlu0 %400  ;;  %v396_v49 = vpop.permute.xlu1 %395 }
  0xa0   : > { %v415_v50 = vadd.f32 %v401_v48, %v383_v45  ;;  %v416_v51 = vadd.f32 %v401_v48, %v384_v46  ;;  %v413_v52 = vadd.f32 %v396_v49, %v381_v44  ;;  %v414_v53 = vadd.f32 %v396_v49, %v382_v47 }
  0xa2   : > { %v423_v54 = vmax.f32 %v415_v50, 0.0  ;;  %v424_v55 = vmax.f32 %v416_v51, 0.0  ;;  %v421_v56 = vmax.f32 %v413_v52, 0.0  ;;  %v422_v57 = vmax.f32 %v414_v53, 0.0 }
  0xa4   : > { %524 = vmatpush.msra.mxu0 %v423_v54  ;;  %855 = vmatpush.msra.mxu2 %v423_v54 }
  0xa5   : > { %565 = vmatpush.msra.mxu1 %v424_v55  ;;  %859 = vmatpush.msra.mxu3 %v424_v55 }
  0xa6   : > { %525 = vmatpush.msra.mxu0 %v421_v56  ;;  %856 = vmatpush.msra.mxu2 %v421_v56 }
  0xa7   : > { %566 = vmatpush.msra.mxu1 %v422_v57  ;;  %860 = vmatpush.msra.mxu3 %v422_v57  ;;  %v458_v4 = vpop.permute.xlu1 %457  ;;  %v453_v9 = vpop.permute.xlu0 %452 }
  0xa8   : > { %824 = vmatmul.msk.f32.vlgmr.msra.gmra.mxu0 %vm485_vm0, %v429_v58  ;;  %829 = vmatmul.msk.f32.vlgmr.msra.gmra.mxu2 %vm485_vm0, %v434_v59 }
  0xa9   : > { %832 = vmatmul.msk.f32.vlgmr.msra.gmra.mxu1 %vm485_vm0, %v429_v58  ;;  %837 = vmatmul.msk.f32.vlgmr.msra.gmra.mxu3 %vm485_vm0, %v434_v59 }
  0xaa   : > { %630 = vmatpush.msrb.mxu2 %v427_v27  ;;  %650 = vmatpush.msrb.mxu3 %v428_v28 }
  0xac   : > { %631 = vmatpush.msrb.mxu2 %v425_v41  ;;  %651 = vmatpush.msrb.mxu3 %v426_v42 }
  0xae   : > { %632 = vmatpush.msrb.mxu2 %v423_v54  ;;  %652 = vmatpush.msrb.mxu3 %v424_v55 }
  0xaf   : > { %v473_v11 = vpop.permute.xlu1 %472  ;;  %v468_v20 = vpop.permute.xlu0 %467 }
  0xb0   : > { %633 = vmatpush.msrb.mxu2 %v421_v56  ;;  %653 = vmatpush.msrb.mxu3 %v422_v57 }
  0xb1   : > { %825 = vmatmul.msk.f32.gmra.mxu0 %vm485_vm0, %v430_v60  ;;  %830 = vmatmul.msk.f32.gmra.mxu2 %vm485_vm0, %v435_v61 }
  0xb2   : > { %833 = vmatmul.msk.f32.gmra.mxu1 %vm485_vm0, %v430_v60  ;;  %838 = vmatmul.msk.f32.gmra.mxu3 %vm485_vm0, %v435_v61 }
  0xb7   : > { %v483_v30 = vpop.permute.xlu0 %482  ;;  %v613_v39 = vpop.permute.xlu1 %612 }
  0xb9   : > { %826 = vmatmul.msk.f32.gmra.mxu0 %vm485_vm0, %v431_v62  ;;  %831 = vmatmul.msk.f32.gmra.mxu2 %vm485_vm0, %v436_v63 }
  0xba   : > { %834 = vmatmul.msk.f32.gmra.mxu1 %vm485_vm0, %v431_v62  ;;  %839 = vmatmul.msk.f32.gmra.mxu3 %vm485_vm0, %v436_v63 }
  0xc1   : > { %827 = vmatmul.msk.f32.gmra.mxu0 %vm485_vm0, %v432_v0  ;;  %840 = vmatmul.msk.f32.vlgmr.msrb.gmra.mxu2 %vm485_vm0, %v608_v1 }
  0xc2   : > { %835 = vmatmul.msk.f32.gmra.mxu1 %vm485_vm0, %v432_v0  ;;  %841 = vmatmul.msk.f32.vlgmr.msrb.gmra.mxu3 %vm485_vm0, %v608_v1 }
  0xc9   : > { %828 = vmatmul.msk.f32.gmra.mxu0 %vm485_vm0, %v433_v2 }
  0xca   : > { %836 = vmatmul.msk.f32.gmra.mxu1 %vm485_vm0, %v433_v2 }
 0x125   : > { %v527_v5 = vpop.f32.mrf.mxu0 }
 0x126   : > { %v528_v6 = vadd.f32 %v527_v5, %v448_v3  ;;  %v568_v7 = vpop.f32.mrf.mxu1 }
 0x127   : > { %v569_v8 = vadd.f32 %v568_v7, %v448_v3 }
 0x128   : > { %592 = vst [vmem:[%s1247_s16] sm:$0xff] %v528_v6 }
 0x129   : > { %593 = vst [vmem:[%s1247_s16 + $0x8] sm:$0xff] %v569_v8 }
 0x12b   : > { %v542_v12 = vpop.f32.mrf.mxu2 }
 0x12c   : > { %v543_v13 = vadd.f32 %v542_v12, %v473_v11  ;;  %v583_v14 = vpop.f32.mrf.mxu3 }
 0x12d   : > { %v584_v15 = vadd.f32 %v583_v14, %v473_v11 }
 0x12e   : > { %602 = vst [vmem:[%s1247_s16 + $0x50] sm:$0xff] %v543_v13  ;;  %v530_v16 = vpop.f32.mrf.mxu0 }
 0x12f   : > { %603 = vst [vmem:[%s1247_s16 + $0x58] sm:$0xff] %v584_v15  ;;  %v531_v17 = vadd.f32 %v530_v16, %v453_v9  ;;  %v571_v18 = vpop.f32.mrf.mxu1 }
 0x130   : > { %v572_v19 = vadd.f32 %v571_v18, %v453_v9 }
 0x131   : > { %594 = vst [vmem:[%s1247_s16 + $0x10] sm:$0xff] %v531_v17 }
 0x132   : > { %595 = vst [vmem:[%s1247_s16 + $0x18] sm:$0xff] %v572_v19 }
 0x134   : > { %v545_v22 = vpop.f32.mrf.mxu2 }
 0x135   : > { %v546_v23 = vadd.f32 %v545_v22, %v478_v21  ;;  %v586_v24 = vpop.f32.mrf.mxu3 }
 0x136   : > { %v587_v25 = vadd.f32 %v586_v24, %v478_v21  ;;  %v533_v26 = vpop.f32.mrf.mxu0 }
 0x137   : > { %604 = vst [vmem:[%s1247_s16 + $0x60] sm:$0xff] %v546_v23  ;;  %v534_v27 = vadd.f32 %v533_v26, %v458_v4  ;;  %v574_v28 = vpop.f32.mrf.mxu1 }
 0x138   : > { %605 = vst [vmem:[%s1247_s16 + $0x68] sm:$0xff] %v587_v25  ;;  %v575_v29 = vadd.f32 %v574_v28, %v458_v4 }
 0x139   : > { %596 = vst [vmem:[%s1247_s16 + $0x20] sm:$0xff] %v534_v27 }
 0x13a   : > { %597 = vst [vmem:[%s1247_s16 + $0x28] sm:$0xff] %v575_v29 }
 0x13c   : > { %v548_v31 = vpop.f32.mrf.mxu2 }
 0x13d   : > { %v549_v32 = vadd.f32 %v548_v31, %v483_v30  ;;  %v589_v33 = vpop.f32.mrf.mxu3 }
 0x13e   : > { %v590_v34 = vadd.f32 %v589_v33, %v483_v30  ;;  %v536_v35 = vpop.f32.mrf.mxu0 }
 0x13f   : > { %606 = vst [vmem:[%s1247_s16 + $0x70] sm:$0xff] %v549_v32  ;;  %v537_v36 = vadd.f32 %v536_v35, %v463_v10  ;;  %v577_v37 = vpop.f32.mrf.mxu1 }
 0x140   : > { %607 = vst [vmem:[%s1247_s16 + $0x78] sm:$0xff] %v590_v34  ;;  %v578_v38 = vadd.f32 %v577_v37, %v463_v10 }
 0x141   : > { %598 = vst [vmem:[%s1247_s16 + $0x30] sm:$0xff] %v537_v36 }
 0x142   : > { %599 = vst [vmem:[%s1247_s16 + $0x38] sm:$0xff] %v578_v38 }
 0x144   : > { %v635_v40 = vpop.f32.mrf.mxu2 }
 0x145   : > { %v636_v41 = vadd.f32 %v635_v40, %v613_v39  ;;  %v655_v42 = vpop.f32.mrf.mxu3 }
 0x146   : > { %v656_v43 = vadd.f32 %v655_v42, %v613_v39  ;;  %v539_v44 = vpop.f32.mrf.mxu0 }
 0x147   : > { %658 = vst [vmem:[%s336_s14] sm:$0xff] %v636_v41  ;;  %v540_v45 = vadd.f32 %v539_v44, %v468_v20  ;;  %v580_v46 = vpop.f32.mrf.mxu1 }
 0x148   : > { %659 = vst [vmem:[%s336_s14 + $0x8] sm:$0xff] %v656_v43  ;;  %v581_v47 = vadd.f32 %v580_v46, %v468_v20 }
 0x149   : > { %600 = vst [vmem:[%s1247_s16 + $0x40] sm:$0xff] %v540_v45 }
 0x14a   : > { %954 = shalt.err (!%p951_p5)
}
 0x14b   : > { %862 = dma.vmem_to_hbm [thread:$0]  (%p1127_p4), %s701_s0, 256, %s703_s1, %s666_s19   ;;  %601 = vst [vmem:[%s1247_s16 + $0x48] sm:$0xff] %v581_v47 }
 0x14c   : > { %s661_s11 = scalar_lea.sflag [#allocation3], %s1244_s12  ;;  %s969_s14 = sshra.s32 %s1275_s2, 4  ;;  %s970_s14 = int_to_ptr.hbm [resolvable:$true] %s969_s14 }
 0x14d   : > { %s971_s22 = scalar_lea.hbm %s970_s14, 128  ;;  %s975_s23 = scalar_lea.hbm %s1333_s7, 256 }
 0x14e   : > { %p972_p6 = scmp.ne.s32.totalorder %s970_s14, %s971_s22  ;;  %p976_p10 = scmp.lt.s32.totalorder %s970_s14, %s1333_s7 }
 0x14f   : > { %p977_p11 = scmp.lt.s32.totalorder %s975_s23, %s971_s22 }
 0x150   : > { %p973_p7 = pnand %p972_p6, %p1127_p4 }
 0x151   : > { %p978_p12 = por %p977_p11, %p976_p10 }
 0x152   : > { %p974_p9 = pneg %p973_p7 }
 0x154   : > { %p979_p13 = pnand %p978_p12, %p974_p9 }
 0x156   : > { %982 = shalt.err (!%p979_p13)
}
 0x157   : > { %s1040_s0 = smov 256   ;;  %s1041_s1 = smov 16  }
 0x158   : > { %861 = dma.vmem_to_hbm [thread:$0]  (%p1127_p4), %s1273_s30, 2048, %s1275_s2, %s661_s11, %s1040_s0, %s1040_s0, %s1041_s1  }
 0x159 PF: > { %p872_p0 = scmp.ge.s32.totalorder %s1037_s10, 2  ;;  %s714_s12 = sand.u32 1, %s1017_s27  }
 0x15a   : > { %s715_s16 = scalar_lea.sflag [#allocation3], %s714_s12 }
 0x15b   : > { %p866_p1 = pnand %p872_p0, %p1134_p8 }
 0x15d   : > { %p867_p2 = pneg %p866_p1 }
 0x15f   : > { %1008 = dma.done.wait (%p867_p2), %s715_s16, 2048  }
 0x160   : > { %1010 = vsyncadd (%p867_p2), %s715_s16, 4294965248  ;;  %s725_s19 = scalar_lea.sflag [#allocation5], %s714_s12 }
 0x161   : > { %1012 = dma.done.wait (%p867_p2), %s725_s19, 256  }
 0x162   : > { %1014 = vsyncadd (%p867_p2), %s725_s19, 4294967040  ;;  %s25_s10 = sadd.s32 1, %s1037_s10   ;;  %s1343_s27 = smov %s1021_s28 }
 0x163   : > { %p22_p3 = scmp.ge.s32.totalorder %s25_s10, 4   ;;  %s1344_s28 = smov %s1025_s29 }
 0x164   : > { %s1345_s29 = smov %s1140_s18  ;;  %s1346_s30 = smov %s1033_s9 }
 0x165   : > { %s1347_s9 = smov %s1349_s13  ;;  %24 = sbr.rel (!%p22_p3) target bundleno = 10 (0xa), region = 100 }
 0x16a   :  { %731 = vsyncpa [#allocation3], 1 }
 0x16b   :  { %733 = vsyncpa [#allocation3 + $0x1], 1 }
 0x16c   :  { %734 = vsyncpa [#allocation5], 1 }
 0x16d   :  { %736 = vsyncpa [#allocation5 + $0x1], 1 }

</bundles_post_ra>
